<compile_context>
chip_gen: v7x
topology: tpu7x:2x2x1
jax: 0.10.0
libtpu: 0.0.40
codegen_flags: <defaults>
</compile_context>

<pallas_src>
import functools

import jax
import jax.numpy as jnp
from jax.experimental import pallas as pl
from jax.experimental.pallas import tpu as pltpu

BN_EPS = 1e-5
LANE = 128


def _round_up(n, m):
    return (n + m - 1) // m * m


def _bn_relu(y, gamma, beta):
    """Training-mode BatchNorm1d folded to scale+shift, then ReLU. f32 math."""
    mean = jnp.mean(y, axis=0, keepdims=True)
    mean_sq = jnp.mean(y * y, axis=0, keepdims=True)
    var = jnp.maximum(mean_sq - mean * mean, 0.0)        # clamp cancellation
    inv_std = jax.lax.rsqrt(var + BN_EPS)
    a = gamma * inv_std                                   # [1, Ph]
    c = beta - mean * a                                   # [1, Ph]
    return jnp.maximum(y * a + c, 0.0)


def _mlp_kernel(x_ref, w_first_ref, b_first_ref, w_hid_ref, b_hid_ref,
                gamma_ref, beta_ref, w_last_ref, b_last_ref,
                o_ref, h_ref, *, n_layers):
    """One MLP layer per grid step; h_ref is the persistent activation."""
    l = pl.program_id(0)
    last = n_layers - 1

    @pl.when(l == 0)
    def _():
        xq = x_ref[...].astype(w_first_ref.dtype)
        y = jnp.dot(xq, w_first_ref[...],
                    preferred_element_type=jnp.float32) + b_first_ref[...]
        h_ref[...] = _bn_relu(y, gamma_ref[0], beta_ref[0])

    @pl.when(jnp.logical_and(l > 0, l < last))
    def _():
        hq = h_ref[...].astype(w_hid_ref.dtype)
        y = jnp.dot(hq, w_hid_ref[0],
                    preferred_element_type=jnp.float32) + b_hid_ref[l - 1]
        h_ref[...] = _bn_relu(y, gamma_ref[l], beta_ref[l])

    @pl.when(l == last)
    def _():
        hq = h_ref[...].astype(w_last_ref.dtype)
        y = jnp.dot(hq, w_last_ref[...],
                    preferred_element_type=jnp.float32) + b_last_ref[...]
        o_ref[...] = y.astype(o_ref.dtype)


def init_mlp_params(key, n_layers, input_dim, hidden_dim, output_dim):
    """Deterministic init mirroring the PyTorch module's parameter shapes."""
    dims = [input_dim] + [hidden_dim] * (n_layers - 1) + [output_dim]
    params = {"linear": [], "bn": []}
    for i in range(n_layers):
        din, dout = dims[i], dims[i + 1]
        key, kw, kb = jax.random.split(key, 3)
        bound = 1.0 / (din ** 0.5)
        w = jax.random.uniform(kw, (dout, din), jnp.float32, -bound, bound)
        b = jax.random.uniform(kb, (dout,), jnp.float32, -bound, bound)
        params["linear"].append((w, b))
    for _ in range(n_layers - 1):
        params["bn"].append((jnp.ones((hidden_dim,), jnp.float32),
                             jnp.zeros((hidden_dim,), jnp.float32)))
    return params


def pack_mlp_params(params, n_layers, input_dim, hidden_dim, output_dim,
                    mxu_dtype=jnp.bfloat16):
    """One-time pack: transpose to [in,out], pad feature dims to 128 lanes
    (asymmetric: first [input_dim,Ph], hidden [L-2,Ph,Ph], last [Ph,Pout]),
    weights in `mxu_dtype`, biases/BN in f32."""
    assert n_layers >= 2, "module semantics assume at least one hidden layer"
    Ph = _round_up(hidden_dim, LANE)
    Pout = _round_up(output_dim, LANE)
    n_hid = max(n_layers - 2, 1)

    w0, b0 = params["linear"][0]                     # [hidden, input]
    wL, bL = params["linear"][n_layers - 1]          # [output, hidden]

    w_first = jnp.zeros((input_dim, Ph), mxu_dtype).at[:, :hidden_dim].set(
        w0.T.astype(mxu_dtype))
    b_first = jnp.zeros((1, Ph), jnp.float32).at[0, :hidden_dim].set(b0)

    w_hid = jnp.zeros((n_hid, Ph, Ph), mxu_dtype)
    b_hid = jnp.zeros((n_hid, 1, Ph), jnp.float32)
    for i in range(1, n_layers - 1):
        w, b = params["linear"][i]                   # [hidden, hidden]
        w_hid = w_hid.at[i - 1, :hidden_dim, :hidden_dim].set(
            w.T.astype(mxu_dtype))
        b_hid = b_hid.at[i - 1, 0, :hidden_dim].set(b)

    w_last = jnp.zeros((Ph, Pout), mxu_dtype).at[:hidden_dim, :output_dim].set(
        wL.T.astype(mxu_dtype))
    b_last = jnp.zeros((1, Pout), jnp.float32).at[0, :output_dim].set(bL)

    # Padded columns carry gamma=beta=0 so BN maps 0 -> 0 and they stay zero.
    gamma = jnp.zeros((n_layers - 1, 1, Ph), jnp.float32)
    beta = jnp.zeros((n_layers - 1, 1, Ph), jnp.float32)
    for i in range(n_layers - 1):
        g, bt = params["bn"][i]
        gamma = gamma.at[i, 0, :hidden_dim].set(g)
        beta = beta.at[i, 0, :hidden_dim].set(bt)

    packed = {"w_first": w_first, "b_first": b_first,
              "w_hid": w_hid, "b_hid": b_hid,
              "gamma": gamma, "beta": beta,
              "w_last": w_last, "b_last": b_last}
    return packed, Ph, Pout


@functools.partial(
    jax.jit,
    static_argnames=("n_layers", "output_dim", "hidden_pad", "out_pad"))
def mlp_forward(x, packed, n_layers, output_dim, hidden_pad, out_pad):
    B, input_dim = x.shape
    Ph, Pout = hidden_pad, out_pad
    L = n_layers
    n_hid = max(L - 2, 1)

    def resident(shape):
        # Constant block index -> fetched once, stays resident across the grid.
        return pl.BlockSpec(shape, lambda l: (0,) * len(shape))

    def w_hid_map(l):
        # Hidden layer l (1 <= l <= L-2) uses stack entry l-1; clamp so the
        # prefetches issued at l==0 / l==L-1 stay in bounds (result unused).
        return (jnp.minimum(jnp.maximum(l - 1, 0), n_hid - 1), 0, 0)

    grid_spec = pltpu.PrefetchScalarGridSpec(
        num_scalar_prefetch=0,
        grid=(L,),
        in_specs=[
            resident((B, input_dim)),                 # x (used at step 0 only)
            resident((input_dim, Ph)),                # first-layer weight
            resident((1, Ph)),                        # first-layer bias
            pl.BlockSpec((1, Ph, Ph), w_hid_map),     # hidden weights, streamed
            resident((n_hid, 1, Ph)),                 # hidden biases (tiny)
            resident((L - 1, 1, Ph)),                 # BN gamma stack
            resident((L - 1, 1, Ph)),                 # BN beta stack
            resident((Ph, Pout)),                     # last-layer weight
            resident((1, Pout)),                      # last-layer bias
        ],
        out_specs=resident((B, Pout)),
        scratch_shapes=[pltpu.VMEM((B, Ph), jnp.float32)],   # persistent h
    )
    kernel = functools.partial(_mlp_kernel, n_layers=L)
    out_p = pl.pallas_call(
        kernel,
        out_shape=jax.ShapeDtypeStruct((B, Pout), jnp.float32),
        grid_spec=grid_spec,
        compiler_params=pltpu.CompilerParams(
            dimension_semantics=("arbitrary",)),
    )(x, packed["w_first"], packed["b_first"], packed["w_hid"],
      packed["b_hid"], packed["gamma"], packed["beta"],
      packed["w_last"], packed["b_last"])
    return out_p[:, :output_dim]


if __name__ == "__main__":
    n_layers = 3
    input_dim, hidden_dim, output_dim = 16, 32, 10
    batch = 8

    key = jax.random.PRNGKey(0)
    key, kx = jax.random.split(key)
    x = jax.random.normal(kx, (batch, input_dim), jnp.float32)

    params = init_mlp_params(key, n_layers, input_dim, hidden_dim, output_dim)

    # Pure-JAX reference (train-mode BN, f32), mirroring the PyTorch forward.
    def ref_forward(x, params):
        h = x
        for i in range(n_layers - 1):
            w, b = params["linear"][i]
            gamma, beta = params["bn"][i]
            y = h @ w.T + b
            mean = jnp.mean(y, axis=0, keepdims=True)
            var = jnp.mean((y - mean) ** 2, axis=0, keepdims=True)
            y = (y - mean) * jax.lax.rsqrt(var + BN_EPS) * gamma + beta
            h = jnp.maximum(y, 0.0)
        w, b = params["linear"][n_layers - 1]
        return h @ w.T + b

    ref = ref_forward(x, params)

    # 1) Exact-math check with f32 weights (tight tolerance).
    packed32, Ph, Pout = pack_mlp_params(params, n_layers, input_dim,
                                         hidden_dim, output_dim,
                                         mxu_dtype=jnp.float32)
    out32 = mlp_forward(x, packed32, n_layers, output_dim, Ph, Pout)
    jax.block_until_ready(out32)
    assert out32.shape == (batch, output_dim), out32.shape
    err32 = float(jnp.max(jnp.abs(out32 - ref)))
    assert err32 < 1e-4, err32

    # 2) Production path: bf16 MXU operands, f32 accumulation / BN statistics.
    packed16, Ph, Pout = pack_mlp_params(params, n_layers, input_dim,
                                         hidden_dim, output_dim,
                                         mxu_dtype=jnp.bfloat16)
    out16 = mlp_forward(x, packed16, n_layers, output_dim, Ph, Pout)
    jax.block_until_ready(out16)
    assert out16.shape == (batch, output_dim), out16.shape
    err16 = float(jnp.max(jnp.abs(out16 - ref)))
    assert err16 < 6e-2, err16          # bf16 weight/activation quantization

    print("KERNEL_OK")
</pallas_src>

<mosaic_0001>
module attributes {stable_mosaic.version = 11 : i64} {
  func.func @_mlp_kernel(%arg0: i32, %arg1: memref<8x16xf32, #tpu.memory_space<vmem>>, %arg2: memref<16x128xf32, #tpu.memory_space<vmem>>, %arg3: memref<1x128xf32, #tpu.memory_space<vmem>>, %arg4: memref<1x128x128xf32, #tpu.memory_space<vmem>>, %arg5: memref<1x1x128xf32, #tpu.memory_space<vmem>>, %arg6: memref<2x1x128xf32, #tpu.memory_space<vmem>>, %arg7: memref<2x1x128xf32, #tpu.memory_space<vmem>>, %arg8: memref<128x128xf32, #tpu.memory_space<vmem>>, %arg9: memref<1x128xf32, #tpu.memory_space<vmem>>, %arg10: memref<8x128xf32, #tpu.memory_space<vmem>>, %arg11: memref<8x128xf32, #tpu.memory_space<vmem>>) attributes {dimension_semantics = [#tpu.dimension_semantics<arbitrary>], iteration_bounds = array<i64: 3>, scalar_prefetch = 0 : i64, scratch_operands = 1 : i64, tpu.core_type = #tpu.core_type<tc>, window_params = [{pipeline_mode = #tpu.pipeline_mode<synchronous>, transform_indices = @transform_0, window_bounds = array<i64: 8, 16>}, {pipeline_mode = #tpu.pipeline_mode<synchronous>, transform_indices = @transform_1, window_bounds = array<i64: 16, 128>}, {pipeline_mode = #tpu.pipeline_mode<synchronous>, transform_indices = @transform_2, window_bounds = array<i64: 1, 128>}, {transform_indices = @transform_3, window_bounds = array<i64: 1, 128, 128>}, {pipeline_mode = #tpu.pipeline_mode<synchronous>, transform_indices = @transform_4, window_bounds = array<i64: 1, 1, 128>}, {pipeline_mode = #tpu.pipeline_mode<synchronous>, transform_indices = @transform_5, window_bounds = array<i64: 2, 1, 128>}, {pipeline_mode = #tpu.pipeline_mode<synchronous>, transform_indices = @transform_6, window_bounds = array<i64: 2, 1, 128>}, {pipeline_mode = #tpu.pipeline_mode<synchronous>, transform_indices = @transform_7, window_bounds = array<i64: 128, 128>}, {pipeline_mode = #tpu.pipeline_mode<synchronous>, transform_indices = @transform_8, window_bounds = array<i64: 1, 128>}, {pipeline_mode = #tpu.pipeline_mode<synchronous>, transform_indices = @transform_9, window_bounds = array<i64: 8, 128>}]} {
    %c0_i32 = arith.constant 0 : i32
    %0 = arith.cmpi eq, %arg0, %c0_i32 : i32
    %1 = arith.extui %0 : i1 to i32
    %c0_i32_0 = arith.constant 0 : i32
    %2 = arith.cmpi ne, %1, %c0_i32_0 : i32
    scf.if %2 {
      %c0 = arith.constant 0 : index
      %c0_5 = arith.constant 0 : index
      %11 = vector.load %arg1[%c0, %c0_5] : memref<8x16xf32, #tpu.memory_space<vmem>>, vector<8x16xf32>
      %c0_6 = arith.constant 0 : index
      %c0_7 = arith.constant 0 : index
      %12 = vector.load %arg2[%c0_6, %c0_7] : memref<16x128xf32, #tpu.memory_space<vmem>>, vector<16x128xf32>
      %cst = arith.constant dense<0.000000e+00> : vector<8x128xf32>
      %13 = tpu.matmul %11, %12, %cst {dimension_numbers = #tpu.dot_dimension_numbers<[1], [0], [0], [1], [0, 0, 1, 1], [], []>} : vector<8x16xf32>, vector<16x128xf32>, vector<8x128xf32> -> vector<8x128xf32>
      %c0_8 = arith.constant 0 : index
      %c0_9 = arith.constant 0 : index
      %14 = vector.load %arg3[%c0_8, %c0_9] : memref<1x128xf32, #tpu.memory_space<vmem>>, vector<1x128xf32>
      %15 = vector.broadcast %14 : vector<1x128xf32> to vector<8x128xf32>
      %16 = arith.addf %13, %15 : vector<8x128xf32>
      %c0_10 = arith.constant 0 : index
      %c0_11 = arith.constant 0 : index
      %c0_12 = arith.constant 0 : index
      %17 = vector.load %arg6[%c0_10, %c0_11, %c0_12] : memref<2x1x128xf32, #tpu.memory_space<vmem>>, vector<1x1x128xf32>
      %18 = vector.shape_cast %17 : vector<1x1x128xf32> to vector<1x128xf32>
      %c0_13 = arith.constant 0 : index
      %c0_14 = arith.constant 0 : index
      %c0_15 = arith.constant 0 : index
      %19 = vector.load %arg7[%c0_13, %c0_14, %c0_15] : memref<2x1x128xf32, #tpu.memory_space<vmem>>, vector<1x1x128xf32>
      %20 = vector.shape_cast %19 : vector<1x1x128xf32> to vector<1x128xf32>
      %cst_16 = arith.constant dense<0.000000e+00> : vector<128xf32>
      %21 = vector.multi_reduction <add>, %16, %cst_16 [0] : vector<8x128xf32> to vector<128xf32>
      %22 = vector.shape_cast %21 : vector<128xf32> to vector<1x128xf32>
      %cst_17 = arith.constant 8.000000e+00 : f32
      %23 = vector.broadcast %cst_17 : f32 to vector<1x128xf32>
      %24 = arith.divf %22, %23 : vector<1x128xf32>
      %25 = arith.mulf %16, %16 : vector<8x128xf32>
      %cst_18 = arith.constant dense<0.000000e+00> : vector<128xf32>
      %26 = vector.multi_reduction <add>, %25, %cst_18 [0] : vector<8x128xf32> to vector<128xf32>
      %27 = vector.shape_cast %26 : vector<128xf32> to vector<1x128xf32>
      %cst_19 = arith.constant 8.000000e+00 : f32
      %28 = vector.broadcast %cst_19 : f32 to vector<1x128xf32>
      %29 = arith.divf %27, %28 : vector<1x128xf32>
      %30 = arith.mulf %24, %24 : vector<1x128xf32>
      %31 = arith.subf %29, %30 : vector<1x128xf32>
      %cst_20 = arith.constant 0.000000e+00 : f32
      %32 = vector.broadcast %cst_20 : f32 to vector<1x128xf32>
      %33 = arith.maximumf %31, %32 : vector<1x128xf32>
      %cst_21 = arith.constant 9.99999974E-6 : f32
      %34 = vector.broadcast %cst_21 : f32 to vector<1x128xf32>
      %35 = arith.addf %33, %34 : vector<1x128xf32>
      %36 = math.rsqrt %35 : vector<1x128xf32>
      %37 = arith.mulf %18, %36 : vector<1x128xf32>
      %38 = arith.mulf %24, %37 : vector<1x128xf32>
      %39 = arith.subf %20, %38 : vector<1x128xf32>
      %40 = vector.broadcast %37 : vector<1x128xf32> to vector<8x128xf32>
      %41 = arith.mulf %16, %40 : vector<8x128xf32>
      %42 = vector.broadcast %39 : vector<1x128xf32> to vector<8x128xf32>
      %43 = arith.addf %41, %42 : vector<8x128xf32>
      %cst_22 = arith.constant 0.000000e+00 : f32
      %44 = vector.broadcast %cst_22 : f32 to vector<8x128xf32>
      %45 = arith.maximumf %43, %44 : vector<8x128xf32>
      %c0_23 = arith.constant 0 : index
      %c0_24 = arith.constant 0 : index
      %46 = vector.load %arg11[%c0_23, %c0_24] : memref<8x128xf32, #tpu.memory_space<vmem>>, vector<8x128xf32>
      tpu.vector_store %arg11[%c0_23, %c0_24], %45 {strides = array<i32>} : memref<8x128xf32, #tpu.memory_space<vmem>>, vector<8x128xf32>,
    } else {
    }
    %c0_i32_1 = arith.constant 0 : i32
    %3 = arith.cmpi sgt, %arg0, %c0_i32_1 : i32
    %c2_i32 = arith.constant 2 : i32
    %4 = arith.cmpi slt, %arg0, %c2_i32 : i32
    %5 = arith.andi %3, %4 : i1
    %6 = arith.extui %5 : i1 to i32
    %c0_i32_2 = arith.constant 0 : i32
    %7 = arith.cmpi ne, %6, %c0_i32_2 : i32
    scf.if %7 {
      %c0 = arith.constant 0 : index
      %c0_5 = arith.constant 0 : index
      %11 = vector.load %arg11[%c0, %c0_5] : memref<8x128xf32, #tpu.memory_space<vmem>>, vector<8x128xf32>
      %c0_6 = arith.constant 0 : index
      %c0_7 = arith.constant 0 : index
      %c0_8 = arith.constant 0 : index
      %12 = vector.load %arg4[%c0_6, %c0_7, %c0_8] : memref<1x128x128xf32, #tpu.memory_space<vmem>>, vector<1x128x128xf32>
      %13 = vector.shape_cast %12 : vector<1x128x128xf32> to vector<128x128xf32>
      %cst = arith.constant dense<0.000000e+00> : vector<8x128xf32>
      %14 = tpu.matmul %11, %13, %cst {dimension_numbers = #tpu.dot_dimension_numbers<[1], [0], [0], [1], [0, 0, 1, 1], [], []>} : vector<8x128xf32>, vector<128x128xf32>, vector<8x128xf32> -> vector<8x128xf32>
      %c1_i32 = arith.constant 1 : i32
      %15 = arith.subi %arg0, %c1_i32 : i32
      %16 = arith.index_cast %15 : i32 to index
      %c0_9 = arith.constant 0 : index
      %c0_10 = arith.constant 0 : index
      %17 = vector.load %arg5[%16, %c0_9, %c0_10] : memref<1x1x128xf32, #tpu.memory_space<vmem>>, vector<1x1x128xf32>
      %18 = vector.shape_cast %17 : vector<1x1x128xf32> to vector<1x128xf32>
      %19 = vector.broadcast %18 : vector<1x128xf32> to vector<8x128xf32>
      %20 = arith.addf %14, %19 : vector<8x128xf32>
      %21 = arith.index_cast %arg0 : i32 to index
      %c0_11 = arith.constant 0 : index
      %c0_12 = arith.constant 0 : index
      %22 = vector.load %arg6[%21, %c0_11, %c0_12] : memref<2x1x128xf32, #tpu.memory_space<vmem>>, vector<1x1x128xf32>
      %23 = vector.shape_cast %22 : vector<1x1x128xf32> to vector<1x128xf32>
      %24 = arith.index_cast %arg0 : i32 to index
      %c0_13 = arith.constant 0 : index
      %c0_14 = arith.constant 0 : index
      %25 = vector.load %arg7[%24, %c0_13, %c0_14] : memref<2x1x128xf32, #tpu.memory_space<vmem>>, vector<1x1x128xf32>
      %26 = vector.shape_cast %25 : vector<1x1x128xf32> to vector<1x128xf32>
      %cst_15 = arith.constant dense<0.000000e+00> : vector<128xf32>
      %27 = vector.multi_reduction <add>, %20, %cst_15 [0] : vector<8x128xf32> to vector<128xf32>
      %28 = vector.shape_cast %27 : vector<128xf32> to vector<1x128xf32>
      %cst_16 = arith.constant 8.000000e+00 : f32
      %29 = vector.broadcast %cst_16 : f32 to vector<1x128xf32>
      %30 = arith.divf %28, %29 : vector<1x128xf32>
      %31 = arith.mulf %20, %20 : vector<8x128xf32>
      %cst_17 = arith.constant dense<0.000000e+00> : vector<128xf32>
      %32 = vector.multi_reduction <add>, %31, %cst_17 [0] : vector<8x128xf32> to vector<128xf32>
      %33 = vector.shape_cast %32 : vector<128xf32> to vector<1x128xf32>
      %cst_18 = arith.constant 8.000000e+00 : f32
      %34 = vector.broadcast %cst_18 : f32 to vector<1x128xf32>
      %35 = arith.divf %33, %34 : vector<1x128xf32>
      %36 = arith.mulf %30, %30 : vector<1x128xf32>
      %37 = arith.subf %35, %36 : vector<1x128xf32>
      %cst_19 = arith.constant 0.000000e+00 : f32
      %38 = vector.broadcast %cst_19 : f32 to vector<1x128xf32>
      %39 = arith.maximumf %37, %38 : vector<1x128xf32>
      %cst_20 = arith.constant 9.99999974E-6 : f32
      %40 = vector.broadcast %cst_20 : f32 to vector<1x128xf32>
      %41 = arith.addf %39, %40 : vector<1x128xf32>
      %42 = math.rsqrt %41 : vector<1x128xf32>
      %43 = arith.mulf %23, %42 : vector<1x128xf32>
      %44 = arith.mulf %30, %43 : vector<1x128xf32>
      %45 = arith.subf %26, %44 : vector<1x128xf32>
      %46 = vector.broadcast %43 : vector<1x128xf32> to vector<8x128xf32>
      %47 = arith.mulf %20, %46 : vector<8x128xf32>
      %48 = vector.broadcast %45 : vector<1x128xf32> to vector<8x128xf32>
      %49 = arith.addf %47, %48 : vector<8x128xf32>
      %cst_21 = arith.constant 0.000000e+00 : f32
      %50 = vector.broadcast %cst_21 : f32 to vector<8x128xf32>
      %51 = arith.maximumf %49, %50 : vector<8x128xf32>
      %c0_22 = arith.constant 0 : index
      %c0_23 = arith.constant 0 : index
      %52 = vector.load %arg11[%c0_22, %c0_23] : memref<8x128xf32, #tpu.memory_space<vmem>>, vector<8x128xf32>
      tpu.vector_store %arg11[%c0_22, %c0_23], %51 {strides = array<i32>} : memref<8x128xf32, #tpu.memory_space<vmem>>, vector<8x128xf32>,
    } else {
    }
    %c2_i32_3 = arith.constant 2 : i32
    %8 = arith.cmpi eq, %arg0, %c2_i32_3 : i32
    %9 = arith.extui %8 : i1 to i32
    %c0_i32_4 = arith.constant 0 : i32
    %10 = arith.cmpi ne, %9, %c0_i32_4 : i32
    scf.if %10 {
      %c0 = arith.constant 0 : index
      %c0_5 = arith.constant 0 : index
      %11 = vector.load %arg11[%c0, %c0_5] : memref<8x128xf32, #tpu.memory_space<vmem>>, vector<8x128xf32>
      %c0_6 = arith.constant 0 : index
      %c0_7 = arith.constant 0 : index
      %12 = vector.load %arg8[%c0_6, %c0_7] : memref<128x128xf32, #tpu.memory_space<vmem>>, vector<128x128xf32>
      %cst = arith.constant dense<0.000000e+00> : vector<8x128xf32>
      %13 = tpu.matmul %11, %12, %cst {dimension_numbers = #tpu.dot_dimension_numbers<[1], [0], [0], [1], [0, 0, 1, 1], [], []>} : vector<8x128xf32>, vector<128x128xf32>, vector<8x128xf32> -> vector<8x128xf32>
      %c0_8 = arith.constant 0 : index
      %c0_9 = arith.constant 0 : index
      %14 = vector.load %arg9[%c0_8, %c0_9] : memref<1x128xf32, #tpu.memory_space<vmem>>, vector<1x128xf32>
      %15 = vector.broadcast %14 : vector<1x128xf32> to vector<8x128xf32>
      %16 = arith.addf %13, %15 : vector<8x128xf32>
      %c0_10 = arith.constant 0 : index
      %c0_11 = arith.constant 0 : index
      %17 = vector.load %arg10[%c0_10, %c0_11] : memref<8x128xf32, #tpu.memory_space<vmem>>, vector<8x128xf32>
      tpu.vector_store %arg10[%c0_10, %c0_11], %16 {strides = array<i32>} : memref<8x128xf32, #tpu.memory_space<vmem>>, vector<8x128xf32>,
    } else {
    }
    return
  }
  func.func @transform_0(%arg0: i32) -> (i32, i32) {
    %c0_i32 = arith.constant 0 : i32
    %c0_i32_0 = arith.constant 0 : i32
    %c0_i32_1 = arith.constant 0 : i32
    return %c0_i32, %c0_i32_0 : i32, i32
  }
  func.func @transform_1(%arg0: i32) -> (i32, i32) {
    %c0_i32 = arith.constant 0 : i32
    %c0_i32_0 = arith.constant 0 : i32
    %c0_i32_1 = arith.constant 0 : i32
    return %c0_i32, %c0_i32_0 : i32, i32
  }
  func.func @transform_2(%arg0: i32) -> (i32, i32) {
    %c0_i32 = arith.constant 0 : i32
    %c0_i32_0 = arith.constant 0 : i32
    %c0_i32_1 = arith.constant 0 : i32
    return %c0_i32, %c0_i32_0 : i32, i32
  }
  func.func @transform_3(%arg0: i32) -> (i32, i32, i32) {
    %c1_i32 = arith.constant 1 : i32
    %0 = arith.subi %arg0, %c1_i32 : i32
    %c0_i32 = arith.constant 0 : i32
    %1 = arith.maxsi %0, %c0_i32 : i32
    %c0_i32_0 = arith.constant 0 : i32
    %2 = arith.minsi %1, %c0_i32_0 : i32
    %c0_i32_1 = arith.constant 0 : i32
    %c0_i32_2 = arith.constant 0 : i32
    %c0_i32_3 = arith.constant 0 : i32
    return %2, %c0_i32_1, %c0_i32_2 : i32, i32, i32
  }
  func.func @transform_4(%arg0: i32) -> (i32, i32, i32) {
    %c0_i32 = arith.constant 0 : i32
    %c0_i32_0 = arith.constant 0 : i32
    %c0_i32_1 = arith.constant 0 : i32
    %c0_i32_2 = arith.constant 0 : i32
    return %c0_i32, %c0_i32_0, %c0_i32_1 : i32, i32, i32
  }
  func.func @transform_5(%arg0: i32) -> (i32, i32, i32) {
    %c0_i32 = arith.constant 0 : i32
    %c0_i32_0 = arith.constant 0 : i32
    %c0_i32_1 = arith.constant 0 : i32
    %c0_i32_2 = arith.constant 0 : i32
    return %c0_i32, %c0_i32_0, %c0_i32_1 : i32, i32, i32
  }
  func.func @transform_6(%arg0: i32) -> (i32, i32, i32) {
    %c0_i32 = arith.constant 0 : i32
    %c0_i32_0 = arith.constant 0 : i32
    %c0_i32_1 = arith.constant 0 : i32
    %c0_i32_2 = arith.constant 0 : i32
    return %c0_i32, %c0_i32_0, %c0_i32_1 : i32, i32, i32
  }
  func.func @transform_7(%arg0: i32) -> (i32, i32) {
    %c0_i32 = arith.constant 0 : i32
    %c0_i32_0 = arith.constant 0 : i32
    %c0_i32_1 = arith.constant 0 : i32
    return %c0_i32, %c0_i32_0 : i32, i32
  }
  func.func @transform_8(%arg0: i32) -> (i32, i32) {
    %c0_i32 = arith.constant 0 : i32
    %c0_i32_0 = arith.constant 0 : i32
    %c0_i32_1 = arith.constant 0 : i32
    return %c0_i32, %c0_i32_0 : i32, i32
  }
  func.func @transform_9(%arg0: i32) -> (i32, i32) {
    %c0_i32 = arith.constant 0 : i32
    %c0_i32_0 = arith.constant 0 : i32
    %c0_i32_1 = arith.constant 0 : i32
    return %c0_i32, %c0_i32_0 : i32, i32
  }
}

</mosaic_0001>

<bundles_post_ra>
// kernel: mlp_forward.1
= control target key start
LH: loop header
LB: loop body
LE: loop exit
PB: predicated region body
PF: predicated region fallthrough
CT: control target
= control target key end

     0   :  { %14 = vsyncpa [#allocation4], 0  ;;  %s1588_s0 = inlined_call_operand.hbm [shape: f32[8,16], index: 0, kind: input, shape index: {}]   ;;  %s1589_s1 = inlined_call_operand.vmem [shape: f32[16,128], index: 1, kind: input, shape index: {}]   ;;  %s1590_s2 = inlined_call_operand.vmem [shape: f32[1,128], index: 2, kind: input, shape index: {}]   ;;  %s1591_s3 = inlined_call_operand.hbm [shape: f32[1,128,128], index: 3, kind: input, shape index: {}]   ;;  %s1592_s4 = inlined_call_operand.vmem [shape: f32[1,1,128], index: 4, kind: input, shape index: {}]   ;;  %s1593_s5 = inlined_call_operand.vmem [shape: f32[2,1,128], index: 5, kind: input, shape index: {}]   ;;  %s1594_s6 = inlined_call_operand.vmem [shape: f32[2,1,128], index: 6, kind: input, shape index: {}]   ;;  %s1595_s7 = inlined_call_operand.hbm [shape: f32[128,128], index: 7, kind: input, shape index: {}]   ;;  %s1596_s8 = inlined_call_operand.hbm [shape: f32[1,128], index: 8, kind: input, shape index: {}]   ;;  %s1597_s9 = inlined_call_operand.hbm [shape: f32[8,128], index: 9, kind: output, shape index: {}]  }
   0x1   :  { %15 = vsyncpa [#allocation7], 0 }
   0x2   :  { %17 = vsyncpa [#allocation7 + $0x1], 0 }
   0x3   :  { %18 = vsyncpa [#allocation10], 0 }
   0x4   :  { %19 = vsyncpa [#allocation5], 0  ;;  %s1374_s30 = smov 0  }
   0x5 LB: > { %s1308_s10 = smov [#allocation8]   ;;  %s1380_s12 = sadd.s32 4294967295, %s1306_s30   ;;  %s1306_s30 = sphi %s1374_s30, %s25_s30  }
   0x6   : > { %s293_s11 = sshll.u32 %s1308_s10, 4  ;;  %p878_p0 = scmp.ge.s32.totalorder %s1306_s30, 1  ;;  %s1386_s11 = int_to_ptr.vmem [resolvable:$true] %s293_s11 }
   0x7   : > { %p1598_p1 = scmp.eq.s32.totalorder %s1380_s12, 0  ;;  %p255_p2 = scmp.lt.s32.totalorder %s1306_s30, 4 }
   0x8   : > { %s1309_s14 = smov [#allocation3]   ;;  %s1310_s17 = smov [#allocation9]  }
   0x9   : > { %p1388_p4 = pnand %p878_p0, %p255_p2  ;;  %s268_s15 = sshll.u32 %s1309_s14, 4  ;;  %s1400_s15 = int_to_ptr.vmem [resolvable:$true] %s268_s15 }
   0xa   : > { %s307_s18 = sshll.u32 %s1310_s17, 4  ;;  %p113_p7 = scmp.eq.s32.totalorder %s1306_s30, 0  ;;  %s1403_s18 = int_to_ptr.vmem [resolvable:$true] %s307_s18 }
   0xb   : > { %s1600_s13 = scalar_select %p1388_p4, 1, 0 }
   0xc   : > { %p1091_p5 = pneg %p1388_p4  ;;  %s1142_s21 = scalar_lea.hbm %s1595_s7, 2048 }
   0xd   : > { %p1143_p8 = scmp.ne.s32.totalorder %s1595_s7, %s1142_s21  ;;  %p1149_p12 = scmp.lt.u32.totalorder %s1142_s21, %s1595_s7 }
   0xe   : > { %p1396_p6 = pnand %p1091_p5, %p1598_p1 }
  0x10   : > { %p1413_p9 = pneg %p1396_p6 }
  0x12   : > { %p1145_p10 = pnand %p1413_p9, %p1143_p8 }
  0x14   : > { %p1146_p11 = pneg %p1145_p10 }
  0x16   : > { %p1151_p13 = pnand %p1149_p12, %p1146_p11 }
  0x18   : > { %1154 = shalt.err (!%p1151_p13)
}
  0x19   : > { %s1155_s27 = scalar_lea.vmem %s1386_s11, 2048  ;;  %p1163_p3 = scmp.lt.s32.totalorder %s1386_s11, %s1386_s11 }
  0x1a   : > { %p1156_p0 = scmp.ne.s32.totalorder %s1386_s11, %s1155_s27  ;;  %p1164_p1 = scmp.lt.s32.totalorder %s1155_s27, %s1155_s27 }
  0x1c   : > { %p1158_p2 = pnand %p1156_p0, %p1413_p9  ;;  %p1165_p8 = por %p1164_p1, %p1163_p3 }
  0x1e   : > { %p1159_p5 = pneg %p1158_p2 }
  0x20   : > { %p1166_p10 = pnand %p1165_p8, %p1159_p5 }
  0x22   : > { %1169 = shalt.err (!%p1166_p10)
}
  0x23   : > { %s1311_s28 = smov 128   ;;  %s1312_s29 = smov 8  }
  0x24   : > { %1097 = dma.hbm_to_vmem [thread:$0]  (!%p1396_p6), %s1595_s7, 2048, %s1386_s11, [#allocation7], %s1311_s28, %s1311_s28, %s1312_s29  }
  0x25   : > { %s1170_s20 = scalar_lea.hbm %s1588_s0, 128 }
  0x26   : > { %p1171_p1 = scmp.ne.s32.totalorder %s1588_s0, %s1170_s20  ;;  %p1177_p12 = scmp.lt.u32.totalorder %s1170_s20, %s1588_s0 }
  0x28   : > { %p1173_p3 = pnand %p1171_p1, %p1413_p9 }
  0x2a   : > { %p1174_p11 = pneg %p1173_p3 }
  0x2c   : > { %p1179_p13 = pnand %p1177_p12, %p1174_p11 }
  0x2e   : > { %1182 = shalt.err (!%p1179_p13)
}
  0x2f   : > { %s1183_s11 = scalar_lea.vmem %s1400_s15, 128  ;;  %p1191_p8 = scmp.lt.s32.totalorder %s1400_s15, %s1400_s15 }
  0x30   : > { %p1184_p0 = scmp.ne.s32.totalorder %s1400_s15, %s1183_s11  ;;  %p1192_p10 = scmp.lt.s32.totalorder %s1183_s11, %s1183_s11 }
  0x32   : > { %p1186_p2 = pnand %p1184_p0, %p1413_p9  ;;  %p1193_p1 = por %p1192_p10, %p1191_p8 }
  0x34   : > { %p1187_p5 = pneg %p1186_p2 }
  0x36   : > { %p1194_p3 = pnand %p1193_p1, %p1187_p5 }
  0x38   : > { %1197 = shalt.err (!%p1194_p3)
}
  0x39   : > { %1094 = dma.hbm_to_vmem [thread:$0]  (!%p1396_p6), %s1588_s0, 128, %s1400_s15, [#allocation4]  }
  0x3a   : > { %s1198_s17 = scalar_lea.hbm %s1596_s8, 16 }
  0x3b   : > { %p1199_p11 = scmp.ne.s32.totalorder %s1596_s8, %s1198_s17  ;;  %p1205_p0 = scmp.lt.u32.totalorder %s1198_s17, %s1596_s8 }
  0x3d   : > { %p1201_p12 = pnand %p1199_p11, %p1413_p9 }
  0x3f   : > { %p1202_p13 = pneg %p1201_p12 }
  0x41   : > { %p1207_p2 = pnand %p1205_p0, %p1202_p13 }
  0x43   : > { %1210 = shalt.err (!%p1207_p2)
}
  0x44   : > { %s1211_s15 = scalar_lea.vmem %s1403_s18, 16  ;;  %s1218_s23 = scalar_lea.vmem %s1403_s18, 32 }
  0x45   : > { %p1212_p5 = scmp.ne.s32.totalorder %s1403_s18, %s1211_s15  ;;  %p1219_p1 = scmp.lt.s32.totalorder %s1403_s18, %s1403_s18 }
  0x46   : > { %p1220_p3 = scmp.lt.s32.totalorder %s1218_s23, %s1211_s15 }
  0x47   : > { %p1214_p8 = pnand %p1212_p5, %p1413_p9 }
  0x48   : > { %p1221_p11 = por %p1220_p3, %p1219_p1 }
  0x49   : > { %p1215_p10 = pneg %p1214_p8 }
  0x4b   : > { %p1222_p12 = pnand %p1221_p11, %p1215_p10 }
  0x4d   : > { %1225 = shalt.err (!%p1222_p12)
}
  0x4e   : > { %1100 = dma.hbm_to_vmem [thread:$0]  (!%p1396_p6), %s1596_s8, 16, %s1403_s18, [#allocation10]  }
  0x4f   : > { %p1108_p13 = scmp.lt.s32.totalorder %s1306_s30, 3  ;;  %s318_s24 = sand.u32 1, %s1306_s30  }
  0x50   : > { %s1313_s26 = smov [#allocation6]   ;;  %s319_s16 = scalar_lea.sflag [#allocation7], %s318_s24 }
  0x51   : > { %s334_s27 = sshll.u32 %s1313_s26, 4  ;;  %p1488_p9 = pnand %p1108_p13, %p113_p7  ;;  %s335_s27 = int_to_ptr.vmem [resolvable:$true] %s334_s27 }
  0x52   : > { %s1226_s19 = scalar_lea.hbm %s1591_s3, 2048 }
  0x53   : > { %p1227_p6 = scmp.ne.s32.totalorder %s1591_s3, %s1226_s19  ;;  %p1228_p0 = pneg %p1488_p9 }
  0x54   : > { %p1233_p7 = scmp.lt.u32.totalorder %s1226_s19, %s1591_s3 }
  0x55   : > { %p1229_p2 = pnand %p1228_p0, %p1227_p6 }
  0x57   : > { %p1230_p5 = pneg %p1229_p2 }
  0x59   : > { %p1235_p8 = pnand %p1233_p7, %p1230_p5 }
  0x5b   : > { %1238 = shalt.err (!%p1235_p8)
}
  0x5c   : > { %s1239_s15 = scalar_lea.vmem %s335_s27, 2048  ;;  %s1246_s23 = scalar_lea.vmem %s335_s27, 4096 }
  0x5d   : > { %p1240_p10 = scmp.ne.s32.totalorder %s335_s27, %s1239_s15  ;;  %p1247_p11 = scmp.lt.s32.totalorder %s335_s27, %s335_s27 }
  0x5e   : > { %p1248_p12 = scmp.lt.s32.totalorder %s1246_s23, %s1239_s15 }
  0x5f   : > { %p1242_p1 = pnand %p1240_p10, %p1228_p0 }
  0x60   : > { %p1249_p13 = por %p1248_p12, %p1247_p11 }
  0x61   : > { %p1243_p3 = pneg %p1242_p1 }
  0x63   : > { %p1250_p4 = pnand %p1249_p13, %p1243_p3 }
  0x65   : > { %1253 = shalt.err (!%p1250_p4)
}
  0x66   : > { %1104 = dma.hbm_to_vmem [thread:$0]  (!%p1488_p9), %s1591_s3, 2048, %s335_s27, %s319_s16, %s1311_s28, %s1311_s28, %s1312_s29  }
  0x67   : > { %p1604_p6 = scmp.ne.s32.totalorder %s1600_s13, 0 }
  0x68   : > { %p1605_p0 = scmp.eq.s32.totalorder (!%p1604_p6), %s1380_s12, 0 }
  0x69   : > { %346 = sbr.rel (%p1604_p6) target bundleno = 961 (0x3c1), region = 56 }
  0x70   : > { %1285 = dma.done.wait (%p1605_p0), [#allocation4], 128   ;;  %p1606_p2 = pmov %p1605_p0 }
  0x71   : > { %s352_s24 = sand.u32 1, %s1380_s12   ;;  %p1607_p4 = pmov %p1605_p0 }
  0x72   : > { %1287 = vsyncadd (%p1606_p2), [#allocation4], 4294967168  ;;  %s353_s26 = scalar_lea.sflag [#allocation7], %s352_s24 }
  0x73   : > { %1289 = dma.done.wait (%p1607_p4), %s353_s26, 2048   ;;  %p1608_p5 = pmov %p1605_p0 }
  0x74   : > { %p1609_p9 = pmov %p1605_p0 }
  0x75   : > { %1291 = vsyncadd (%p1608_p5), %s353_s26, 4294965248 }
  0x76   : > { %1293 = dma.done.wait (%p1609_p9), [#allocation7], 2048   ;;  %p1610_p7 = pmov %p1605_p0 }
  0x77   : > { %p1611_p8 = pmov %p1605_p0 }
  0x78   : > { %1295 = vsyncadd (%p1610_p7), [#allocation7], 4294965248 }
  0x79   : > { %1297 = dma.done.wait (%p1611_p8), [#allocation10], 16   ;;  %p1612_p10 = pmov %p1605_p0 }
  0x7a   : > { %p1613_p1 = scmp.ne.s32.totalorder %s1380_s12, 0 }
  0x7b   : > { %1299 = vsyncadd (%p1612_p10), [#allocation10], 4294967280  ;;  %v404_v0 = vld [vmem:[%s1589_s1] sm:$0xff] (!%p1613_p1)  ;;  %v405_v1 = vld [vmem:[%s1589_s1 + $0x8] sm:$0xff] (!%p1613_p1)  ;;  %v1314_v2 = vmov (!%p1613_p1), 0.0|0.0   ;;  %vm1315_vm0 = vmmov (!%p1613_p1), 0   ;;  %v514_v29 = vlaneseq (!%p1613_p1) }
  0x7c   : > { %402 = sbr.rel (%p1613_p1) target bundleno = 389 (0x185), region = 76  ;;  %1022 = vmatprep.subr.bf16.mxu0 (!%p1613_p1), %v1314_v2  ;;  %v1023_v3 = vpack.c.bf16 (!%p1613_p1), %v405_v1, %v404_v0  ;;  %v1316_v4 = vmov (!%p1613_p1), 0.0   ;;  %v403_v5 = vld [vmem:[#allocation3] sm:$0xff] (!%p1613_p1)  ;;  %vm413_vm1 = vcmask (!%p1613_p1), 130048   ;;  %v898_v6 = vld [vmem:[%s1590_s2] ss:$0 sm:$0xff] (!%p1613_p1) }
  0x7d   : > { %949 = vmatprep.mubr.msk.f32.mxu0 (!%p1613_p1), %vm1315_vm0, %v1316_v4  ;;  %v515_v30 = vshrl.u32 (!%p1613_p1), %v514_v29, 7  ;;  %v487_v31 = vld [vmem:[%s1593_s5] sm:$0x1] (!%p1613_p1) }
  0x7e   : > { %1024 = vmatpush3.bf16.msra.mxu0 (!%p1613_p1), %v1023_v3  ;;  %v488_v35 = vld [vmem:[%s1594_s6] sm:$0x1] (!%p1613_p1) }
  0x7f   : > { %v516_v32 = vsub.s32 (!%p1613_p1), 0, %v515_v30 }
  0x81   : > { %950 = vmatmul.mubr.msk.f32.vlgmr.msra.gmra.mrb[0].mxu0 (!%p1613_p1), %vm413_vm1, %v403_v5 }
 0x154   : > { %v483_v7 = vpop.f32.mrb[0].mxu0 }
 0x155   : > { %v484_v8 = vadd.f32 %v898_v6, %v483_v7  ;;  %v951_v9 = vpop.f32.mrb[1].mxu0 }
 0x157   : > { %v489_v10 = vrot.slane %v484_v8, 4  ;;  %v497_v11 = vmul.f32 %v484_v8, %v484_v8 }
 0x159   : > { %v490_v12 = vadd.f32 %v489_v10, %v484_v8  ;;  %v498_v13 = vrot.slane %v497_v11, 4 }
 0x15b   : > { %v491_v14 = vrot.slane %v490_v12, 2  ;;  %v499_v15 = vadd.f32 %v498_v13, %v497_v11 }
 0x15d   : > { %v492_v16 = vadd.f32 %v491_v14, %v490_v12  ;;  %v500_v17 = vrot.slane %v499_v15, 2 }
 0x15f   : > { %v493_v18 = vrot.slane %v492_v16, 1  ;;  %v501_v19 = vadd.f32 %v500_v17, %v499_v15 }
 0x161   : > { %v494_v20 = vadd.f32 %v493_v18, %v492_v16  ;;  %v502_v21 = vrot.slane %v501_v19, 1 }
 0x163   : > { %v496_v22 = vmul.f32 0.125, %v494_v20  ;;  %v503_v23 = vadd.f32 %v502_v21, %v501_v19 }
 0x165   : > { %v504_v24 = vmul.f32 0.125, %v503_v23  ;;  %v505_v25 = vmul.f32 %v496_v22, %v496_v22 }
 0x167   : > { %v506_v26 = vsub.f32 %v504_v24, %v505_v25 }
 0x169   : > { %v507_v27 = vmax.f32 %v506_v26, 0.0 }
 0x16b   : > { %v508_v28 = vadd.f32 1e-05, %v507_v27 }
 0x16d   : > { %1138 = vrsqrt.f32 %v508_v28 }
 0x177   : > { %v1139_v33 = vpop.eup %1138 }
 0x178   : > { %v510_v34 = vmul.f32 %v1139_v33, %v487_v31 }
 0x17a   : > { %v511_v36 = vmul.f32 %v510_v34, %v496_v22  ;;  %v517_v37 = vrot.slane %v510_v34, %v516_v32 }
 0x17c   : > { %v512_v38 = vsub.f32 %v488_v35, %v511_v36  ;;  %v519_v39 = vmul.f32 %v517_v37, %v484_v8 }
 0x17e   : > { %v524_v40 = vrot.slane %v512_v38, %v516_v32 }
 0x180   : > { %v526_v41 = vadd.f32 %v524_v40, %v519_v39 }
 0x182   : > { %v527_v42 = vmax.f32 %v526_v41, 0.0 }
 0x184   : > { %528 = vst [vmem:[#allocation2] sm:$0xff] %v527_v42 }
 0x185 PF: > { %p529_p3 = scmp.gt.s32.totalorder %s1380_s12, 0  ;;  %p530_p11 = scmp.lt.s32.totalorder %s1380_s12, 2 }
 0x187   : > { %p531_p12 = pnand %p530_p11, %p529_p3 }
 0x188   : > { %v536_v43 = vld [vmem:[#allocation6] sm:$0xff] (!%p531_p12)  ;;  %v537_v44 = vld [vmem:[#allocation6 + $0x8] sm:$0xff] (!%p531_p12)  ;;  %v538_v45 = vld [vmem:[#allocation6 + $0x10] sm:$0xff] (!%p531_p12)  ;;  %v1317_v46 = vmov (!%p531_p12), 0.0|0.0   ;;  %vm1318_vm2 = vmmov (!%p531_p12), 0   ;;  %v1319_v49 = vmov (!%p531_p12), 0.0   ;;  %v660_v29 = vlaneseq (!%p531_p12)  ;;  %s631_s11 = scalar_lea.vmem (!%p531_p12), %s1593_s5, %s1380_s12  ;;  %s633_s13 = scalar_lea.vmem (!%p531_p12), %s1594_s6, %s1380_s12 }
 0x189   : > { %534 = sbr.rel (%p531_p12) target bundleno = 686 (0x2ae), region = 80  ;;  %1025 = vmatprep.subr.bf16.mxu0 (!%p531_p12), %v1317_v46  ;;  %v1026_v47 = vpack.c.bf16 (!%p531_p12), %v537_v44, %v536_v43  ;;  %v539_v48 = vld [vmem:[#allocation6 + $0x18] sm:$0xff] (!%p531_p12)  ;;  %984 = vmatprep.mubr.msk.f32.mxu0 (!%p531_p12), %vm1318_vm2, %v1319_v49  ;;  %v540_v51 = vld [vmem:[#allocation6 + $0x20] sm:$0xff] (!%p531_p12)  ;;  %v541_v52 = vld [vmem:[#allocation6 + $0x28] sm:$0xff] (!%p531_p12)  ;;  %s900_s21 = sadd.s32 (!%p531_p12), 4294967295, %s1380_s12 }
 0x18a   : > { %v1029_v50 = vpack.c.bf16 (!%p531_p12), %v539_v48, %v538_v45  ;;  %v1032_v53 = vpack.c.bf16 (!%p531_p12), %v541_v52, %v540_v51  ;;  %v542_v54 = vld [vmem:[#allocation6 + $0x30] sm:$0xff] (!%p531_p12)  ;;  %v543_v55 = vld [vmem:[#allocation6 + $0x38] sm:$0xff] (!%p531_p12)  ;;  %v544_v57 = vld [vmem:[#allocation6 + $0x40] sm:$0xff] (!%p531_p12)  ;;  %s553_s15 = scalar_lea.vmem (!%p531_p12), %s1592_s4, %s900_s21  ;;  %v661_v30 = vshrl.u32 (!%p531_p12), %v660_v29, 7 }
 0x18b   : > { %1027 = vmatpush3.bf16.msra.mxu0 (!%p531_p12), %v1026_v47  ;;  %v1035_v56 = vpack.c.bf16 (!%p531_p12), %v543_v55, %v542_v54  ;;  %v545_v58 = vld [vmem:[#allocation6 + $0x48] sm:$0xff] (!%p531_p12)  ;;  %v546_v60 = vld [vmem:[#allocation6 + $0x50] sm:$0xff] (!%p531_p12)  ;;  %v547_v61 = vld [vmem:[#allocation6 + $0x58] sm:$0xff] (!%p531_p12) }
 0x18c   : > { %1028 = vmatprep.subr.bf16.mxu0 (!%p531_p12), %v1317_v46  ;;  %v1038_v59 = vpack.c.bf16 (!%p531_p12), %v545_v58, %v544_v57  ;;  %v1041_v62 = vpack.c.bf16 (!%p531_p12), %v547_v61, %v546_v60  ;;  %v548_v63 = vld [vmem:[#allocation6 + $0x60] sm:$0xff] (!%p531_p12)  ;;  %v549_v0 = vld [vmem:[#allocation6 + $0x68] sm:$0xff] (!%p531_p12)  ;;  %v550_v2 = vld [vmem:[#allocation6 + $0x70] sm:$0xff] (!%p531_p12)  ;;  %v662_v32 = vsub.s32 (!%p531_p12), 0, %v661_v30 }
 0x18d   : > { %v1044_v1 = vpack.c.bf16 (!%p531_p12), %v549_v0, %v548_v63  ;;  %v551_v3 = vld [vmem:[#allocation6 + $0x78] sm:$0xff] (!%p531_p12)  ;;  %v535_v5 = vld [vmem:[#allocation2] sm:$0xff] (!%p531_p12)  ;;  %v901_v6 = vld [vmem:[%s553_s15] ss:$0 sm:$0xff] (!%p531_p12) }
 0x18e   : > { %v1047_v4 = vpack.c.bf16 (!%p531_p12), %v551_v3, %v550_v2  ;;  %v632_v31 = vld [vmem:[%s631_s11] sm:$0x1] (!%p531_p12) }
 0x18f   : > { %1030 = vmatpush3.bf16.msra.mxu0 (!%p531_p12), %v1029_v50  ;;  %v634_v35 = vld [vmem:[%s633_s13] sm:$0x1] (!%p531_p12) }
 0x190   : > { %1031 = vmatprep.subr.bf16.mxu0 %v1317_v46 }
 0x193   : > { %1033 = vmatpush3.bf16.msra.mxu0 %v1032_v53 }
 0x194   : > { %1034 = vmatprep.subr.bf16.mxu0 %v1317_v46 }
 0x197   : > { %1036 = vmatpush3.bf16.msra.mxu0 %v1035_v56 }
 0x198   : > { %1037 = vmatprep.subr.bf16.mxu0 %v1317_v46 }
 0x19b   : > { %1039 = vmatpush3.bf16.msra.mxu0 %v1038_v59 }
 0x19c   : > { %1040 = vmatprep.subr.bf16.mxu0 %v1317_v46 }
 0x19f   : > { %1042 = vmatpush3.bf16.msra.mxu0 %v1041_v62 }
 0x1a0   : > { %1043 = vmatprep.subr.bf16.mxu0 %v1317_v46 }
 0x1a3   : > { %1045 = vmatpush3.bf16.msra.mxu0 %v1044_v1 }
 0x1a4   : > { %1046 = vmatprep.subr.bf16.mxu0 %v1317_v46 }
 0x1a7   : > { %1048 = vmatpush3.bf16.msra.mxu0 %v1047_v4 }
 0x1aa   : > { %985 = vmatmul.mubr.f32.vlgmr.msra.gmra.mrb[0].mxu0 %v535_v5 }
 0x27d   : > { %v627_v7 = vpop.f32.mrb[0].mxu0 }
 0x27e   : > { %v628_v8 = vadd.f32 %v901_v6, %v627_v7  ;;  %v986_v9 = vpop.f32.mrb[1].mxu0 }
 0x280   : > { %v635_v10 = vrot.slane %v628_v8, 4  ;;  %v643_v11 = vmul.f32 %v628_v8, %v628_v8 }
 0x282   : > { %v636_v12 = vadd.f32 %v635_v10, %v628_v8  ;;  %v644_v13 = vrot.slane %v643_v11, 4 }
 0x284   : > { %v637_v14 = vrot.slane %v636_v12, 2  ;;  %v645_v15 = vadd.f32 %v644_v13, %v643_v11 }
 0x286   : > { %v638_v16 = vadd.f32 %v637_v14, %v636_v12  ;;  %v646_v17 = vrot.slane %v645_v15, 2 }
 0x288   : > { %v639_v18 = vrot.slane %v638_v16, 1  ;;  %v647_v19 = vadd.f32 %v646_v17, %v645_v15 }
 0x28a   : > { %v640_v20 = vadd.f32 %v639_v18, %v638_v16  ;;  %v648_v21 = vrot.slane %v647_v19, 1 }
 0x28c   : > { %v642_v22 = vmul.f32 0.125, %v640_v20  ;;  %v649_v23 = vadd.f32 %v648_v21, %v647_v19 }
 0x28e   : > { %v650_v24 = vmul.f32 0.125, %v649_v23  ;;  %v651_v25 = vmul.f32 %v642_v22, %v642_v22 }
 0x290   : > { %v652_v26 = vsub.f32 %v650_v24, %v651_v25 }
 0x292   : > { %v653_v27 = vmax.f32 %v652_v26, 0.0 }
 0x294   : > { %v654_v28 = vadd.f32 1e-05, %v653_v27 }
 0x296   : > { %1140 = vrsqrt.f32 %v654_v28 }
 0x2a0   : > { %v1141_v33 = vpop.eup %1140 }
 0x2a1   : > { %v656_v34 = vmul.f32 %v1141_v33, %v632_v31 }
 0x2a3   : > { %v657_v36 = vmul.f32 %v656_v34, %v642_v22  ;;  %v663_v37 = vrot.slane %v656_v34, %v662_v32 }
 0x2a5   : > { %v658_v38 = vsub.f32 %v634_v35, %v657_v36  ;;  %v665_v39 = vmul.f32 %v663_v37, %v628_v8 }
 0x2a7   : > { %v670_v40 = vrot.slane %v658_v38, %v662_v32 }
 0x2a9   : > { %v672_v41 = vadd.f32 %v670_v40, %v665_v39 }
 0x2ab   : > { %v673_v42 = vmax.f32 %v672_v41, 0.0 }
 0x2ad   : > { %674 = vst [vmem:[#allocation2] sm:$0xff] %v673_v42 }
 0x2ae PF: > { %p902_p13 = scmp.ne.s32.totalorder %s1380_s12, 2 }
 0x2af   : > { %v680_v43 = vld [vmem:[#allocation8] sm:$0xff] (!%p902_p13)  ;;  %v681_v44 = vld [vmem:[#allocation8 + $0x8] sm:$0xff] (!%p902_p13)  ;;  %v682_v45 = vld [vmem:[#allocation8 + $0x10] sm:$0xff] (!%p902_p13)  ;;  %v1320_v46 = vmov (!%p902_p13), 0.0|0.0   ;;  %vm1321_vm3 = vmmov (!%p902_p13), 0   ;;  %v1322_v49 = vmov (!%p902_p13), 0.0  }
 0x2b0   : > { %678 = sbr.rel (%p902_p13) target bundleno = 936 (0x3a8), region = 84  ;;  %1049 = vmatprep.subr.bf16.mxu0 (!%p902_p13), %v1320_v46  ;;  %v1050_v47 = vpack.c.bf16 (!%p902_p13), %v681_v44, %v680_v43  ;;  %v683_v48 = vld [vmem:[#allocation8 + $0x18] sm:$0xff] (!%p902_p13)  ;;  %1019 = vmatprep.mubr.msk.f32.mxu0 (!%p902_p13), %vm1321_vm3, %v1322_v49  ;;  %v684_v51 = vld [vmem:[#allocation8 + $0x20] sm:$0xff] (!%p902_p13)  ;;  %v685_v52 = vld [vmem:[#allocation8 + $0x28] sm:$0xff] (!%p902_p13) }
 0x2b1   : > { %v1053_v50 = vpack.c.bf16 (!%p902_p13), %v683_v48, %v682_v45  ;;  %v1056_v53 = vpack.c.bf16 (!%p902_p13), %v685_v52, %v684_v51  ;;  %v686_v54 = vld [vmem:[#allocation8 + $0x30] sm:$0xff] (!%p902_p13)  ;;  %v687_v55 = vld [vmem:[#allocation8 + $0x38] sm:$0xff] (!%p902_p13)  ;;  %v688_v57 = vld [vmem:[#allocation8 + $0x40] sm:$0xff] (!%p902_p13) }
 0x2b2   : > { %1051 = vmatpush3.bf16.msra.mxu0 (!%p902_p13), %v1050_v47  ;;  %v1059_v56 = vpack.c.bf16 (!%p902_p13), %v687_v55, %v686_v54  ;;  %v689_v58 = vld [vmem:[#allocation8 + $0x48] sm:$0xff] (!%p902_p13)  ;;  %v690_v60 = vld [vmem:[#allocation8 + $0x50] sm:$0xff] (!%p902_p13)  ;;  %v691_v61 = vld [vmem:[#allocation8 + $0x58] sm:$0xff] (!%p902_p13) }
 0x2b3   : > { %1052 = vmatprep.subr.bf16.mxu0 (!%p902_p13), %v1320_v46  ;;  %v1062_v59 = vpack.c.bf16 (!%p902_p13), %v689_v58, %v688_v57  ;;  %v1065_v62 = vpack.c.bf16 (!%p902_p13), %v691_v61, %v690_v60  ;;  %v692_v63 = vld [vmem:[#allocation8 + $0x60] sm:$0xff] (!%p902_p13)  ;;  %v693_v0 = vld [vmem:[#allocation8 + $0x68] sm:$0xff] (!%p902_p13)  ;;  %v694_v2 = vld [vmem:[#allocation8 + $0x70] sm:$0xff] (!%p902_p13) }
 0x2b4   : > { %v1068_v1 = vpack.c.bf16 (!%p902_p13), %v693_v0, %v692_v63  ;;  %v695_v3 = vld [vmem:[#allocation8 + $0x78] sm:$0xff] (!%p902_p13)  ;;  %v679_v5 = vld [vmem:[#allocation2] sm:$0xff] (!%p902_p13)  ;;  %v903_v6 = vld [vmem:[#allocation9] ss:$0 sm:$0xff] (!%p902_p13) }
 0x2b5   : > { %v1071_v4 = vpack.c.bf16 (!%p902_p13), %v695_v3, %v694_v2 }
 0x2b6   : > { %1054 = vmatpush3.bf16.msra.mxu0 (!%p902_p13), %v1053_v50 }
 0x2b7   : > { %1055 = vmatprep.subr.bf16.mxu0 %v1320_v46 }
 0x2ba   : > { %1057 = vmatpush3.bf16.msra.mxu0 %v1056_v53 }
 0x2bb   : > { %1058 = vmatprep.subr.bf16.mxu0 %v1320_v46 }
 0x2be   : > { %1060 = vmatpush3.bf16.msra.mxu0 %v1059_v56 }
 0x2bf   : > { %1061 = vmatprep.subr.bf16.mxu0 %v1320_v46 }
 0x2c2   : > { %1063 = vmatpush3.bf16.msra.mxu0 %v1062_v59 }
 0x2c3   : > { %1064 = vmatprep.subr.bf16.mxu0 %v1320_v46 }
 0x2c6   : > { %1066 = vmatpush3.bf16.msra.mxu0 %v1065_v62 }
 0x2c7   : > { %1067 = vmatprep.subr.bf16.mxu0 %v1320_v46 }
 0x2ca   : > { %1069 = vmatpush3.bf16.msra.mxu0 %v1068_v1 }
 0x2cb   : > { %1070 = vmatprep.subr.bf16.mxu0 %v1320_v46 }
 0x2ce   : > { %1072 = vmatpush3.bf16.msra.mxu0 %v1071_v4 }
 0x2d1   : > { %1020 = vmatmul.mubr.f32.vlgmr.msra.gmra.mrb[0].mxu0 %v679_v5 }
 0x3a4   : > { %v769_v7 = vpop.f32.mrb[0].mxu0 }
 0x3a5   : > { %v770_v8 = vadd.f32 %v903_v6, %v769_v7  ;;  %v1021_v9 = vpop.f32.mrb[1].mxu0 }
 0x3a7   : > { %773 = vst [vmem:[#allocation11] sm:$0xff] %v770_v8 }
 0x3a8 PF: > { %p1112_p6 = scmp.eq.s32.totalorder %s1380_s12, 2  ;;  %s1323_s28 = smov [#allocation11]  }
 0x3a9   : > { %s781_s29 = sshll.u32 %s1323_s28, 4  ;;  %s782_s29 = int_to_ptr.vmem [resolvable:$true] %s781_s29 }
 0x3aa   : > { %s1254_s27 = scalar_lea.vmem %s782_s29, 128  ;;  %p1261_p5 = scmp.lt.s32.totalorder %s782_s29, %s782_s29 }
 0x3ab   : > { %p1255_p0 = scmp.ne.s32.totalorder %s782_s29, %s1254_s27  ;;  %p1262_p9 = scmp.lt.s32.totalorder %s1254_s27, %s1254_s27 }
 0x3ad   : > { %p1256_p2 = pnand %p1255_p0, %p1112_p6  ;;  %p1263_p7 = por %p1262_p9, %p1261_p5 }
 0x3af   : > { %p1257_p4 = pneg %p1256_p2 }
 0x3b1   : > { %p1264_p8 = pnand %p1263_p7, %p1257_p4 }
 0x3b3   : > { %1267 = shalt.err (!%p1264_p8)
}
 0x3b4   : > { %s1268_s14 = scalar_lea.hbm %s1597_s9, 128 }
 0x3b5   : > { %p1269_p10 = scmp.ne.s32.totalorder %s1597_s9, %s1268_s14  ;;  %p1274_p11 = scmp.lt.u32.totalorder %s1268_s14, %s1597_s9 }
 0x3b7   : > { %p1270_p1 = pnand %p1269_p10, %p1112_p6 }
 0x3b9   : > { %p1271_p3 = pneg %p1270_p1 }
 0x3bb   : > { %p1276_p12 = pnand %p1274_p11, %p1271_p3 }
 0x3bd   : > { %1279 = shalt.err (!%p1276_p12)
}
 0x3be   : > { %1088 = dma.vmem_to_hbm [thread:$0]  (%p1112_p6), %s782_s29, 128, %s1597_s9, [#allocation5]  }
 0x3bf   : > { %1301 = dma.done.wait (%p1112_p6), [#allocation5], 128  }
 0x3c0   : > { %1303 = vsyncadd (%p1112_p6), [#allocation5], 4294967168 }
 0x3c1 PF: > { %s25_s30 = sadd.s32 1, %s1306_s30  }
 0x3c2   : > { %p22_p13 = scmp.ge.s32.totalorder %s25_s30, 5  }
 0x3c4   :  { %24 = sbr.rel (!%p22_p13) target bundleno = 5 (0x5), region = 121 }
 0x3cb   :  { %794 = vsyncpa [#allocation4], 1 }
 0x3cc   :  { %796 = vsyncpa [#allocation4 + $0x1], 1 }
 0x3cd   :  { %797 = vsyncpa [#allocation7], 1 }
 0x3ce   :  { %799 = vsyncpa [#allocation7 + $0x1], 1 }
 0x3cf   :  { %800 = vsyncpa [#allocation10], 1 }
 0x3d0   :  { %801 = vsyncpa [#allocation5], 1 }
 0x3d1   :  { %803 = vsyncpa [#allocation5 + $0x1], 1 }

</bundles_post_ra>
